<compile_context>
chip_gen: v6e
topology: v6e:2x2x1
jax: 0.10.0
libtpu: 0.0.40
codegen_flags: <defaults>
</compile_context>

<pallas_src>
import math
from functools import partial

import jax
import jax.numpy as jnp
from jax import lax
from jax.experimental import pallas as pl
from jax.experimental.pallas import tpu as pltpu

LANE = 128
INNER = 256          # rows per inner sub-chunk (bounds compiler temps to ~128 KiB each)
NEG = -1e30          # sigmoid(NEG) == 0 -> masked / padded elements contribute nothing


def _make_kernel(w0, w1, block_rows, n_valid_rows, need_mask, uniform):
    """Builds the kernel body. All hyper-params are static Python values."""
    n_full = block_rows // INNER       # full inner sub-chunks per block
    rem = block_rows % INNER           # static trailing sub-chunk

    def kernel(x_ref, lab_ref, out_ref):
        # x_ref:   (2, block_rows, 128)  logits (f32 or bf16)
        # lab_ref: (P, block_rows, 128)  uint8 label planes (P = 1 or 2)
        # out_ref: (3, 8, 128) f32       per-batch partial sums [TP, S1, FN]
        j = pl.program_id(1)
        nj = pl.num_programs(1)

        @pl.when(j == 0)
        def _init():
            out_ref[...] = jnp.zeros((3, 8, LANE), jnp.float32)

        def fold8(v, rows):
            # (rows, 128) f32 -> (8, 128) partial sums using only vreg adds.
            if rows % 8:
                v = jnp.concatenate(
                    [v, jnp.zeros((8 - rows % 8, LANE), jnp.float32)], axis=0)
            return v.reshape(-1, 8, LANE).sum(axis=0)

        def chunk(start, rows, masked, carry):
            tp_v, s1_v, fn_v = carry
            x0 = x_ref[0, pl.ds(start, rows), :].astype(jnp.float32)
            x1 = x_ref[1, pl.ds(start, rows), :].astype(jnp.float32)
            if masked:
                # Rows >= n_valid_rows of the last grid block hold unspecified
                # data; select before any math so nothing (even NaN) propagates.
                r = (j * block_rows + start
                     + lax.broadcasted_iota(jnp.int32, (rows, 1), 0))
                valid = r < n_valid_rows
                x0 = jnp.where(valid, x0, jnp.float32(NEG))
                x1 = jnp.where(valid, x1, jnp.float32(NEG))
            # sigmoid(x) = 0.5 * tanh(0.5 x) + 0.5  (single EUP op per logit)
            p0 = 0.5 * jnp.tanh(0.5 * x0) + 0.5
            p1 = 0.5 * jnp.tanh(0.5 * x1) + 0.5
            t = lab_ref[0, pl.ds(start, rows), :].astype(jnp.float32)
            if uniform:
                s1 = p1                      # coef == w is applied in the wrapper
                tp = p1 * t
                fn = p0 * t
            else:
                xo = lab_ref[1, pl.ds(start, rows), :].astype(jnp.float32)
                coef = jnp.float32(w1) + jnp.float32(w0 - w1) * xo
                s1 = p1 * coef
                tp = s1 * t
                fn = (p0 * coef) * t
            return (tp_v + fold8(tp, rows),
                    s1_v + fold8(s1, rows),
                    fn_v + fold8(fn, rows))

        def process(masked):
            z = jnp.zeros((8, LANE), jnp.float32)
            carry = (z, z, z)
            if n_full:
                def body(i, c):
                    start = pl.multiple_of(i * INNER, INNER)
                    return chunk(start, INNER, masked, c)
                carry = lax.fori_loop(0, n_full, body, carry)
            if rem:
                carry = chunk(n_full * INNER, rem, masked, carry)
            tp_v, s1_v, fn_v = carry
            out_ref[0] = out_ref[0] + tp_v
            out_ref[1] = out_ref[1] + s1_v
            out_ref[2] = out_ref[2] + fn_v

        if need_mask:
            @pl.when(j != nj - 1)
            def _main():
                process(False)

            @pl.when(j == nj - 1)
            def _tail():
                process(True)
        else:
            process(False)

    return kernel


def focal_tversky_loss2(inputs, targets, *, smooth=1.0, alpha=0.5, beta=0.5,
                        gamma=0.75, weights=(1.0, 1.0), block_rows=4096):
    """Pallas implementation of FocalTverskyLoss2.forward.

    inputs:  (B, 2, D, H, W) float logits (f32 or bf16)
    targets: (B, D, H, W, 2) integer / bool label maps
    returns: scalar float32 loss
    """
    B = inputs.shape[0]
    assert inputs.shape[1] == 2, "expected exactly two logit channels"
    assert targets.shape[-1] == 2, "expected two label planes in last dim"
    spatial = math.prod(inputs.shape[2:])
    assert targets.shape[0] == B and math.prod(targets.shape[1:-1]) == spatial

    w0, w1 = float(weights[0]), float(weights[1])
    uniform = (w0 == w1)

    # ---- glue: pack labels into 1 (uniform weights) or 2 uint8 planes ----
    # TODO(synk): fuse this into the targets producer so it reads bool/uint8
    # instead of widened int32 targets.
    tgt = targets if targets.dtype == jnp.bool_ else (targets != 0)
    l1 = tgt[..., 0].reshape(B, spatial)
    l2 = tgt[..., 1].reshape(B, spatial)
    t_u8 = jnp.logical_or(l1, l2).astype(jnp.uint8)
    if uniform:
        lab = t_u8[:, None, :]                               # (B, 1, spatial)
    else:
        x_u8 = jnp.logical_xor(l1, l2).astype(jnp.uint8)
        lab = jnp.stack([t_u8, x_u8], axis=1)                # (B, 2, spatial)
    P = lab.shape[1]

    # Logits: keep caller dtype (bf16 halves the dominant HBM stream); the
    # regroup below is a free view when spatial % 128 == 0.
    x = inputs.reshape(B, 2, spatial)

    pad = (-spatial) % LANE
    if pad:
        # TODO(synk): avoid this full copy by masking the lane tail in-kernel.
        x = jnp.pad(x, ((0, 0), (0, 0), (0, pad)), constant_values=NEG)
        lab = jnp.pad(lab, ((0, 0), (0, 0), (0, pad)))
    R = (spatial + pad) // LANE
    x = x.reshape(B, 2, R, LANE)
    lab = lab.reshape(B, P, R, LANE)

    if R <= block_rows:
        br = R
    else:
        br = max((block_rows // 32) * 32, 32)   # keep uint8 sublane tiling clean
    n_chunks = pl.cdiv(R, br)
    need_mask = (R % br) != 0

    kernel = _make_kernel(w0, w1, br, R, need_mask, uniform)

    partial_sums = pl.pallas_call(
        kernel,
        out_shape=jax.ShapeDtypeStruct((B, 3, 8, LANE), jnp.float32),
        grid_spec=pltpu.PrefetchScalarGridSpec(
            num_scalar_prefetch=0,
            grid=(B, n_chunks),
            in_specs=[
                pl.BlockSpec((None, 2, br, LANE), lambda b, j: (b, 0, j, 0)),
                pl.BlockSpec((None, P, br, LANE), lambda b, j: (b, 0, j, 0)),
            ],
            out_specs=pl.BlockSpec((None, 3, 8, LANE), lambda b, j: (b, 0, 0, 0)),
        ),
        compiler_params=pltpu.CompilerParams(
            dimension_semantics=("parallel", "arbitrary")),
    )(x, lab)

    sums = jnp.sum(partial_sums, axis=(0, 2, 3))      # [TP_raw, S1_raw, FN_raw]
    scale = jnp.float32(w0) if uniform else jnp.float32(1.0)
    TP = scale * sums[0]
    S1 = scale * sums[1]
    FN = scale * sums[2]
    FP = S1 - TP
    tversky = (TP + smooth) / (TP + alpha * FP + beta * FN + smooth)
    # max() only guards against rounding; the base is mathematically >= 0.
    return jnp.maximum(1.0 - tversky, 0.0) ** jnp.float32(gamma)


def _reference_loss(inputs, targets, smooth=1.0, alpha=0.5, beta=0.5,
                    gamma=0.75, weights=(1.0, 1.0)):
    """Pure-JAX mirror of the PyTorch module (for correctness checking)."""
    l1 = targets[..., 0] != 0
    l2 = targets[..., 1] != 0
    xor = jnp.logical_xor(l1, l2)
    coef = (xor.astype(jnp.float32) * weights[0]
            + jnp.logical_not(xor).astype(jnp.float32) * weights[1])
    t = jnp.logical_or(l1, l2).astype(jnp.float32)
    s = jax.nn.sigmoid(inputs.astype(jnp.float32))
    p0 = s[:, 0].reshape(-1)
    p1 = s[:, 1].reshape(-1)
    t = t.reshape(-1)
    coef = coef.reshape(-1)
    TP = jnp.sum(p1 * t * coef)
    FP = jnp.sum((1.0 - t) * p1 * coef)
    FN = jnp.sum(t * p0 * coef)
    tv = (TP + smooth) / (TP + alpha * FP + beta * FN + smooth)
    return (1.0 - tv) ** gamma


if __name__ == "__main__":
    keys = jax.random.split(jax.random.PRNGKey(0), 16)

    def run_case(idx, B, D, H, W, *, block_rows=4096, weights=(1.0, 1.0),
                 logit_dtype=jnp.float32, target_dtype=jnp.int32):
        k1, k2 = jax.random.split(keys[idx])
        inputs = jax.random.normal(k1, (B, 2, D, H, W), dtype=jnp.float32)
        inputs = inputs.astype(logit_dtype)
        targets = jax.random.bernoulli(k2, 0.5, (B, D, H, W, 2))
        if target_dtype is not None:
            targets = targets.astype(target_dtype)
        fn = jax.jit(partial(focal_tversky_loss2,
                             block_rows=block_rows, weights=weights))
        loss = jax.block_until_ready(fn(inputs, targets))
        ref = _reference_loss(inputs, targets, weights=weights)
        assert jnp.allclose(loss, ref, rtol=2e-4, atol=2e-5), (idx, loss, ref)

    # 0: aligned spatial (2048), single small block, uniform weights, f32.
    run_case(0, 2, 8, 16, 16)
    # 1: multi-chunk + masked tail + inner fori_loop: R=640, br=512 -> 2 chunks.
    run_case(1, 1, 20, 64, 64, block_rows=512)
    # 2: multi-chunk + masked tail, rem-only path: R=80, br=32 -> 3 chunks.
    run_case(2, 1, 8, 32, 40, block_rows=32)
    # 3: spatial not a multiple of 128 -> wrapper pad path.
    run_case(3, 1, 8, 31, 33, block_rows=32)
    # 4: bf16 logits (halved HBM stream), bool targets (cheap label pre-pass).
    run_case(4, 2, 8, 16, 16, logit_dtype=jnp.bfloat16, target_dtype=None)
    # 5: non-uniform class weights -> 2 uint8 label planes + in-kernel coef.
    run_case(5, 1, 8, 32, 32, block_rows=32, weights=(2.0, 0.5))

    print("KERNEL_OK")
</pallas_src>

<mosaic_0001>
module attributes {stable_mosaic.version = 11 : i64} {
  func.func @kernel(%arg0: i32, %arg1: i32, %arg2: memref<1x2x16x128xf32, #tpu.memory_space<vmem>>, %arg3: memref<1x1x16x128xi8, #tpu.memory_space<vmem>>, %arg4: memref<1x3x8x128xf32, #tpu.memory_space<vmem>>) attributes {dimension_semantics = [#tpu.dimension_semantics<parallel>, #tpu.dimension_semantics<arbitrary>], iteration_bounds = array<i64: 2, 1>, scalar_prefetch = 0 : i64, scratch_operands = 0 : i64, tpu.core_type = #tpu.core_type<tc>, window_params = [{transform_indices = @transform_0, window_bounds = array<i64: 1, 2, 16, 128>}, {transform_indices = @transform_1, window_bounds = array<i64: 1, 1, 16, 128>}, {transform_indices = @transform_2, window_bounds = array<i64: 1, 3, 8, 128>}]} {
    %c0_i32 = arith.constant 0 : i32
    %0 = arith.cmpi eq, %arg1, %c0_i32 : i32
    %1 = arith.extui %0 : i1 to i32
    %c0_i32_0 = arith.constant 0 : i32
    %2 = arith.cmpi ne, %1, %c0_i32_0 : i32
    scf.if %2 {
      %cst_43 = arith.constant 0.000000e+00 : f32
      %54 = vector.broadcast %cst_43 : f32 to vector<3x8x128xf32>
      %c0_44 = arith.constant 0 : index
      %c0_45 = arith.constant 0 : index
      %c0_46 = arith.constant 0 : index
      %c0_47 = arith.constant 0 : index
      %55 = vector.load %arg4[%c0_44, %c0_45, %c0_46, %c0_47] : memref<1x3x8x128xf32, #tpu.memory_space<vmem>>, vector<1x3x8x128xf32>
      %56 = vector.shape_cast %55 : vector<1x3x8x128xf32> to vector<3x8x128xf32>
      %57 = vector.shape_cast %54 : vector<3x8x128xf32> to vector<1x3x8x128xf32>
      tpu.vector_store %arg4[%c0_44, %c0_45, %c0_46, %c0_47], %57 {strides = array<i32>} : memref<1x3x8x128xf32, #tpu.memory_space<vmem>>, vector<1x3x8x128xf32>,
    } else {
    }
    %cst = arith.constant 0.000000e+00 : f32
    %3 = vector.broadcast %cst : f32 to vector<8x128xf32>
    %c0 = arith.constant 0 : index
    %c0_1 = arith.constant 0 : index
    %c0_2 = arith.constant 0 : index
    %c0_3 = arith.constant 0 : index
    %4 = vector.load %arg2[%c0, %c0_1, %c0_2, %c0_3] : memref<1x2x16x128xf32, #tpu.memory_space<vmem>>, vector<1x1x16x128xf32>
    %5 = vector.shape_cast %4 : vector<1x1x16x128xf32> to vector<16x128xf32>
    %c0_4 = arith.constant 0 : index
    %c1 = arith.constant 1 : index
    %c0_5 = arith.constant 0 : index
    %c0_6 = arith.constant 0 : index
    %6 = vector.load %arg2[%c0_4, %c1, %c0_5, %c0_6] : memref<1x2x16x128xf32, #tpu.memory_space<vmem>>, vector<1x1x16x128xf32>
    %7 = vector.shape_cast %6 : vector<1x1x16x128xf32> to vector<16x128xf32>
    %cst_7 = arith.constant 5.000000e-01 : f32
    %8 = vector.broadcast %cst_7 : f32 to vector<16x128xf32>
    %9 = arith.mulf %8, %5 : vector<16x128xf32>
    %10 = math.tanh %9 : vector<16x128xf32>
    %cst_8 = arith.constant 5.000000e-01 : f32
    %11 = vector.broadcast %cst_8 : f32 to vector<16x128xf32>
    %12 = arith.mulf %11, %10 : vector<16x128xf32>
    %cst_9 = arith.constant 5.000000e-01 : f32
    %13 = vector.broadcast %cst_9 : f32 to vector<16x128xf32>
    %14 = arith.addf %12, %13 : vector<16x128xf32>
    %cst_10 = arith.constant 5.000000e-01 : f32
    %15 = vector.broadcast %cst_10 : f32 to vector<16x128xf32>
    %16 = arith.mulf %15, %7 : vector<16x128xf32>
    %17 = math.tanh %16 : vector<16x128xf32>
    %cst_11 = arith.constant 5.000000e-01 : f32
    %18 = vector.broadcast %cst_11 : f32 to vector<16x128xf32>
    %19 = arith.mulf %18, %17 : vector<16x128xf32>
    %cst_12 = arith.constant 5.000000e-01 : f32
    %20 = vector.broadcast %cst_12 : f32 to vector<16x128xf32>
    %21 = arith.addf %19, %20 : vector<16x128xf32>
    %c0_13 = arith.constant 0 : index
    %c0_14 = arith.constant 0 : index
    %c0_15 = arith.constant 0 : index
    %c0_16 = arith.constant 0 : index
    %22 = vector.load %arg3[%c0_13, %c0_14, %c0_15, %c0_16] : memref<1x1x16x128xi8, #tpu.memory_space<vmem>>, vector<1x1x16x128xi8>
    %23 = vector.shape_cast %22 : vector<1x1x16x128xi8> to vector<16x128xi8>
    %24 = arith.uitofp %23 : vector<16x128xi8> to vector<16x128xf32>
    %25 = arith.mulf %21, %24 : vector<16x128xf32>
    %26 = arith.mulf %14, %24 : vector<16x128xf32>
    %27 = vector.shape_cast %25 : vector<16x128xf32> to vector<2x8x128xf32>
    %cst_17 = arith.constant dense<0.000000e+00> : vector<8x128xf32>
    %28 = vector.multi_reduction <add>, %27, %cst_17 [0] : vector<2x8x128xf32> to vector<8x128xf32>
    %29 = arith.addf %3, %28 : vector<8x128xf32>
    %30 = vector.shape_cast %21 : vector<16x128xf32> to vector<2x8x128xf32>
    %cst_18 = arith.constant dense<0.000000e+00> : vector<8x128xf32>
    %31 = vector.multi_reduction <add>, %30, %cst_18 [0] : vector<2x8x128xf32> to vector<8x128xf32>
    %32 = arith.addf %3, %31 : vector<8x128xf32>
    %33 = vector.shape_cast %26 : vector<16x128xf32> to vector<2x8x128xf32>
    %cst_19 = arith.constant dense<0.000000e+00> : vector<8x128xf32>
    %34 = vector.multi_reduction <add>, %33, %cst_19 [0] : vector<2x8x128xf32> to vector<8x128xf32>
    %35 = arith.addf %3, %34 : vector<8x128xf32>
    %c0_20 = arith.constant 0 : index
    %c0_21 = arith.constant 0 : index
    %c0_22 = arith.constant 0 : index
    %c0_23 = arith.constant 0 : index
    %36 = vector.load %arg4[%c0_20, %c0_21, %c0_22, %c0_23] : memref<1x3x8x128xf32, #tpu.memory_space<vmem>>, vector<1x1x8x128xf32>
    %37 = vector.shape_cast %36 : vector<1x1x8x128xf32> to vector<8x128xf32>
    %38 = arith.addf %37, %29 : vector<8x128xf32>
    %c0_24 = arith.constant 0 : index
    %c0_25 = arith.constant 0 : index
    %c0_26 = arith.constant 0 : index
    %c0_27 = arith.constant 0 : index
    %39 = vector.load %arg4[%c0_24, %c0_25, %c0_26, %c0_27] : memref<1x3x8x128xf32, #tpu.memory_space<vmem>>, vector<1x1x8x128xf32>
    %40 = vector.shape_cast %39 : vector<1x1x8x128xf32> to vector<8x128xf32>
    %41 = vector.shape_cast %38 : vector<8x128xf32> to vector<1x1x8x128xf32>
    tpu.vector_store %arg4[%c0_24, %c0_25, %c0_26, %c0_27], %41 {strides = array<i32>} : memref<1x3x8x128xf32, #tpu.memory_space<vmem>>, vector<1x1x8x128xf32>,
    %c0_28 = arith.constant 0 : index
    %c1_29 = arith.constant 1 : index
    %c0_30 = arith.constant 0 : index
    %c0_31 = arith.constant 0 : index
    %42 = vector.load %arg4[%c0_28, %c1_29, %c0_30, %c0_31] : memref<1x3x8x128xf32, #tpu.memory_space<vmem>>, vector<1x1x8x128xf32>
    %43 = vector.shape_cast %42 : vector<1x1x8x128xf32> to vector<8x128xf32>
    %44 = arith.addf %43, %32 : vector<8x128xf32>
    %c0_32 = arith.constant 0 : index
    %c1_33 = arith.constant 1 : index
    %c0_34 = arith.constant 0 : index
    %c0_35 = arith.constant 0 : index
    %45 = vector.load %arg4[%c0_32, %c1_33, %c0_34, %c0_35] : memref<1x3x8x128xf32, #tpu.memory_space<vmem>>, vector<1x1x8x128xf32>
    %46 = vector.shape_cast %45 : vector<1x1x8x128xf32> to vector<8x128xf32>
    %47 = vector.shape_cast %44 : vector<8x128xf32> to vector<1x1x8x128xf32>
    tpu.vector_store %arg4[%c0_32, %c1_33, %c0_34, %c0_35], %47 {strides = array<i32>} : memref<1x3x8x128xf32, #tpu.memory_space<vmem>>, vector<1x1x8x128xf32>,
    %c0_36 = arith.constant 0 : index
    %c2 = arith.constant 2 : index
    %c0_37 = arith.constant 0 : index
    %c0_38 = arith.constant 0 : index
    %48 = vector.load %arg4[%c0_36, %c2, %c0_37, %c0_38] : memref<1x3x8x128xf32, #tpu.memory_space<vmem>>, vector<1x1x8x128xf32>
    %49 = vector.shape_cast %48 : vector<1x1x8x128xf32> to vector<8x128xf32>
    %50 = arith.addf %49, %35 : vector<8x128xf32>
    %c0_39 = arith.constant 0 : index
    %c2_40 = arith.constant 2 : index
    %c0_41 = arith.constant 0 : index
    %c0_42 = arith.constant 0 : index
    %51 = vector.load %arg4[%c0_39, %c2_40, %c0_41, %c0_42] : memref<1x3x8x128xf32, #tpu.memory_space<vmem>>, vector<1x1x8x128xf32>
    %52 = vector.shape_cast %51 : vector<1x1x8x128xf32> to vector<8x128xf32>
    %53 = vector.shape_cast %50 : vector<8x128xf32> to vector<1x1x8x128xf32>
    tpu.vector_store %arg4[%c0_39, %c2_40, %c0_41, %c0_42], %53 {strides = array<i32>} : memref<1x3x8x128xf32, #tpu.memory_space<vmem>>, vector<1x1x8x128xf32>,
    return
  }
  func.func @transform_0(%arg0: i32, %arg1: i32) -> (i32, i32, i32, i32) {
    %c0_i32 = arith.constant 0 : i32
    %c0_i32_0 = arith.constant 0 : i32
    %c0_i32_1 = arith.constant 0 : i32
    return %arg0, %c0_i32, %arg1, %c0_i32_0 : i32, i32, i32, i32
  }
  func.func @transform_1(%arg0: i32, %arg1: i32) -> (i32, i32, i32, i32) {
    %c0_i32 = arith.constant 0 : i32
    %c0_i32_0 = arith.constant 0 : i32
    %c0_i32_1 = arith.constant 0 : i32
    return %arg0, %c0_i32, %arg1, %c0_i32_0 : i32, i32, i32, i32
  }
  func.func @transform_2(%arg0: i32, %arg1: i32) -> (i32, i32, i32, i32) {
    %c0_i32 = arith.constant 0 : i32
    %c0_i32_0 = arith.constant 0 : i32
    %c0_i32_1 = arith.constant 0 : i32
    %c0_i32_2 = arith.constant 0 : i32
    return %arg0, %c0_i32, %c0_i32_0, %c0_i32_1 : i32, i32, i32, i32
  }
}

</mosaic_0001>

<bundles_post_ra>
// kernel: focal_tversky_loss2.1
= control target key start
LH: loop header
LB: loop body
LE: loop exit
PB: predicated region body
PF: predicated region fallthrough
CT: control target
= control target key end

     0   :  { %s449_s9 = smov 0   ;;  %s451_s10 = smov 0   ;;  %s490_s0 = inlined_call_operand.vmem [shape: f32[2,2,16,128], index: 0, kind: input, shape index: {}]   ;;  %s491_s1 = inlined_call_operand.vmem [shape: u8[2,1,16,128], index: 1, kind: input, shape index: {}]   ;;  %s492_s2 = inlined_call_operand.vmem [shape: f32[2,3,8,128], index: 2, kind: output, shape index: {}]  }
   0x1   :  { %s453_s11 = smov 0  }
   0x2 LB: > { %s24_s12 = sadd.s32 1, %s428_s10  ;;  %p356_p0 = scmp.ge.s32.totalorder %s432_s11, 1  ;;  %s432_s11 = sphi %s453_s11, %s12_s11   ;;  %s428_s10 = sphi %s451_s10, %s494_s10   ;;  %s424_s9 = sphi %s449_s9, %s493_s9  }
   0x3   : > { %p26_p1 = scmp.ge.s32.totalorder %s24_s12, 2  ;;  %p148_p2 = scmp.lt.s32.totalorder %s432_s11, 3 }
   0x5   : > { %s496_s12 = smov (%p26_p1, %s24_s12), 0  ;;  %p149_p3 = pnand %p356_p0, %p148_p2 }
   0x6   : > { %p184_p4 = scmp.lt.s32.totalorder (!%p149_p3), %s424_s9, 1 }
   0x7   : > { %152 = sbr.rel (%p149_p3) target bundleno = 44 (0x2c), region = 28 }
   0xc   : > { %s498_s9 = smov (!%p184_p4, %s424_s9), 1 }
   0xd   : > { %s370_s13 = sshll.u32 %s498_s9, 5  ;;  %s371_s17 = sshll.u32 %s498_s9, 2 }
   0xe   : > { %s191_s16 = scalar_lea.vmem %s490_s0, %s370_s13  ;;  %s201_s20 = scalar_lea.vmem %s491_s1, %s371_s17 }
   0xf   : > { %v362_v0 = vld [vmem:[%s191_s16 + $0x10] sm:$0xff]  ;;  %v363_v1 = vld [vmem:[%s191_s16 + $0x18] sm:$0xff]  ;;  %v215_v2 = vld [vmem:[%s191_s16] sm:$0xff]  ;;  %s376_s21 = smul.u32 24, %s498_s9 }
  0x10   : > { %v228_v3 = vmul.f32 0.5, %v362_v0  ;;  %v229_v4 = vmul.f32 0.5, %v363_v1  ;;  %v216_v5 = vld [vmem:[%s191_s16 + $0x8] sm:$0xff]  ;;  %v220_v6 = vmul.f32 0.5, %v215_v2  ;;  %v373_v8 = vld [vmem:[%s201_s20] sm:$0xf]  }
  0x11   : > { %v221_v7 = vmul.f32 0.5, %v216_v5  ;;  %v374_v9 = vunpack.c.0.s8 %v373_v8  ;;  %v375_v10 = vunpack.c.1.s8 %v373_v8  ;;  %s207_s24 = scalar_lea.vmem %s492_s2, %s376_s21 }
  0x12   : > { %402 = vtanh.f32 %v228_v3 }
  0x13   : > { %404 = vtanh.f32 %v229_v4  ;;  %v240_v11 = vand.u32 255, %v374_v9  ;;  %v241_v12 = vand.u32 255, %v375_v10 }
  0x14   : > { %406 = vtanh.f32 %v220_v6 }
  0x15   : > { %408 = vtanh.f32 %v221_v7  ;;  %v242_v16 = vcvt.s32.f32 %v240_v11  ;;  %v243_v19 = vcvt.s32.f32 %v241_v12 }
  0x1f   : > { %v403_v13 = vpop.eup %402 }
  0x20   : > { %v405_v14 = vpop.eup %404  ;;  %v232_v15 = vmul.f32 0.5, %v403_v13 }
  0x21   : > { %v407_v17 = vpop.eup %406  ;;  %v233_v18 = vmul.f32 0.5, %v405_v14 }
  0x22   : > { %v409_v20 = vpop.eup %408  ;;  %v234_v21 = vadd.f32 0.5, %v232_v15  ;;  %v224_v22 = vmul.f32 0.5, %v407_v17 }
  0x23   : > { %v235_v23 = vadd.f32 0.5, %v233_v18  ;;  %v225_v24 = vmul.f32 0.5, %v409_v20 }
  0x24   : > { %v244_v25 = vmul.f32 %v242_v16, %v234_v21  ;;  %v226_v26 = vadd.f32 0.5, %v224_v22 }
  0x25   : > { %v245_v27 = vmul.f32 %v243_v19, %v235_v23  ;;  %v250_v28 = vadd.f32 %v235_v23, %v234_v21  ;;  %v227_v29 = vadd.f32 0.5, %v225_v24 }
  0x26   : > { %v246_v30 = vmul.f32 %v242_v16, %v226_v26 }
  0x27   : > { %v248_v31 = vadd.f32 %v245_v27, %v244_v25  ;;  %v247_v32 = vmul.f32 %v243_v19, %v227_v29  ;;  %365 = vst [vmem:[%s207_s24 + $0x8] sm:$0xff] %v250_v28 }
  0x29   : > { %v252_v33 = vadd.f32 %v247_v32, %v246_v30  ;;  %256 = vst [vmem:[%s207_s24] sm:$0xff] %v248_v31 }
  0x2b   : > { %367 = vst [vmem:[%s207_s24 + $0x10] sm:$0xff] %v252_v33 }
  0x2c PF: > { %s12_s11 = sadd.s32 1, %s432_s11   ;;  %s493_s9 = smov %s428_s10 }
  0x2d   : > { %p9_p5 = scmp.ge.s32.totalorder %s12_s11, 4   ;;  %s494_s10 = smov %s496_s12 }
  0x2f   :  { %11 = sbr.rel (!%p9_p5) target bundleno = 2 (0x2), region = 68 }

</bundles_post_ra>
